<compile_context>
chip_gen: v7x
topology: tpu7x:2x2x1
jax: 0.10.0
libtpu: 0.0.40
codegen_flags: <defaults>
</compile_context>

<pallas_src>
import functools

import jax
import jax.numpy as jnp
from jax.experimental import pallas as pl
from jax.experimental.pallas import tpu as pltpu

SMOOTH = 1e-05


# ---------------------------------------------------------------------------
# Generation-aware VMEM budgeting.
# ---------------------------------------------------------------------------
def _vmem_budget():
    """Returns (working_set_budget_bytes, vmem_limit_bytes)."""
    phys = 64 * 1024 * 1024            # conservative default (v7x per-TC VMEM)
    try:
        if hasattr(pltpu, "get_tpu_info"):
            info = pltpu.get_tpu_info()
            phys = int(getattr(info, "vmem_capacity_bytes", phys)) or phys
    except Exception:
        pass
    # v5e/v6e (128 MiB physical) -> 96 MiB limit; v7x (64 MiB) -> 48 MiB limit.
    vmem_limit = max(32 * 1024 * 1024, min((phys * 3) // 4, 96 * 1024 * 1024))
    # Working-set budget for input blocks (double-buffered) + f32 temporaries;
    # leaves headroom for compiler scratch under the limit.
    budget = (vmem_limit * 3) // 5
    return budget, vmem_limit


def _bytes_per_row(M, itemsize):
    # 2 inputs x 2 pipeline buffers x itemsize  +  ~4 live f32 temporaries.
    return M * (4 * itemsize + 16)


def _choose_tile(N, M, itemsize, budget):
    """Whole array if it fits the budget (single-fetch path); otherwise the
    largest divisor of N that is a multiple of 8 and fits the budget."""
    budget_rows = max(8, budget // max(1, _bytes_per_row(M, itemsize)))
    if N <= budget_rows:
        return N
    divisors = [d for d in range(8, int(budget_rows) + 1, 8) if N % d == 0]
    if divisors:
        return max(divisors)
    # TODO(synk): pad N to a multiple of 8 / use a masked tail tile instead of
    # falling back to a resident block that may exceed the VMEM budget.
    return N


# ---------------------------------------------------------------------------
# Kernels.
# ---------------------------------------------------------------------------
def _tversky_resident_kernel(x_ref, t_ref, o_ref, *, alpha_beta, logit,
                             inv_count, newton):
    """Whole problem in VMEM: one HBM stream, one sigmoid, fused reduction."""
    x = x_ref[...].astype(jnp.float32)
    if logit:
        x = jax.nn.sigmoid(x)
    t = t_ref[...].astype(jnp.float32)

    # intersection[n] = sum_m x*t ; the reference broadcast indexes it by the
    # lane (spatial) position and N == M, so one tiny transpose suffices.
    inter_col = jnp.sum(x * t, axis=1, keepdims=True)           # (N, 1)
    ip = inter_col.T + SMOOTH                                   # (1, N) == (1, M)

    den = ip + alpha_beta * jnp.abs(x - t)                      # (N, M), SMOOTH folded
    r = pl.reciprocal(den, approx=True)                         # EUP slot
    if newton:
        r = r * (2.0 - den * r)                                 # ~f32 accuracy
    # tversky = ip * r ; reassociated so the ip multiply is once per lane.
    colsum = jnp.sum(r, axis=0, keepdims=True)                  # (1, M)
    total = jnp.sum(ip * colsum, axis=1, keepdims=True)         # (1, 1)
    # mean over dim=1 then full mean in the reference == plain full mean.
    o_ref[...] = 1.0 - total * inv_count


def _intersection_kernel(x_ref, t_ref, o_ref, *, logit):
    x = x_ref[...].astype(jnp.float32)
    if logit:
        x = jax.nn.sigmoid(x)
    t = t_ref[...].astype(jnp.float32)
    o_ref[...] = jnp.sum(x * t, axis=1, keepdims=True)          # (tile_n, 1)


def _tversky_tile_kernel(ip_ref, x_ref, t_ref, o_ref, *, alpha_beta, logit,
                         newton):
    x = x_ref[...].astype(jnp.float32)
    if logit:
        x = jax.nn.sigmoid(x)
    t = t_ref[...].astype(jnp.float32)
    ip = ip_ref[...]                                            # (1, M) = inter + SMOOTH
    den = ip + alpha_beta * jnp.abs(x - t)                      # (tile_n, M)
    r = pl.reciprocal(den, approx=True)
    if newton:
        r = r * (2.0 - den * r)
    colsum = jnp.sum(r, axis=0, keepdims=True)                  # (1, M)
    partial = jnp.sum(ip * colsum, axis=1, keepdims=True)       # (1, 1)
    # Per-tile partial sum in its own (8, 128) output block so the row-tile
    # grid axis can be "parallel" (v7x: shard across both TensorCores).
    o_ref[...] = jnp.zeros_like(o_ref)
    o_ref[0:1, 0:1] = partial


# ---------------------------------------------------------------------------
# Wrapper.
# ---------------------------------------------------------------------------
def soft_tversky_loss(inp, tgt, *, alpha, beta, logit=True, newton=True,
                      tile_n=None, check_bounds=False):
    B, C, W, H = inp.shape
    assert W == B and H == C, (
        "SoftTverskyLoss's broadcast (intersection:(B,C) + abs:(B,C,W,H)) "
        "only type-checks when W == B and H == C")
    N, M = B * C, W * H

    # Keep the original dtype (bf16 friendly); the f32 cast happens on-tile.
    x2d = jnp.reshape(inp, (N, M))
    t2d = jnp.reshape(tgt, (N, M))
    itemsize = jnp.dtype(inp.dtype).itemsize
    budget, vmem_limit = _vmem_budget()

    if tile_n is None:
        tile_n = _choose_tile(N, M, itemsize, budget)
    assert N % tile_n == 0 and (tile_n % 8 == 0 or tile_n == N), (tile_n, N)

    alpha_beta = float(alpha) + float(beta)
    inv_count = 1.0 / float(N * M)
    bytes_in = 2 * N * M * itemsize

    if tile_n == N:
        # -------- resident path: one kernel, one HBM stream per input. ------
        kernel = functools.partial(
            _tversky_resident_kernel, alpha_beta=alpha_beta, logit=bool(logit),
            inv_count=inv_count, newton=bool(newton))
        loss2d = pl.pallas_call(
            kernel,
            out_shape=jax.ShapeDtypeStruct((1, 1), jnp.float32),
            grid=(1,),
            in_specs=[pl.BlockSpec((N, M), lambda i: (0, 0)),
                      pl.BlockSpec((N, M), lambda i: (0, 0))],
            out_specs=pl.BlockSpec((1, 1), lambda i: (0, 0)),
            compiler_params=pltpu.CompilerParams(
                dimension_semantics=("arbitrary",),
                vmem_limit_bytes=vmem_limit),
            cost_estimate=pl.CostEstimate(
                flops=10 * N * M, transcendentals=3 * N * M,
                bytes_accessed=bytes_in + 4),
        )(x2d, t2d)
        loss = jnp.reshape(loss2d, (1,))
    else:
        n_tiles = N // tile_n
        # -------- call 1: per-row intersection (row axis "parallel"). -------
        inter_col = pl.pallas_call(
            functools.partial(_intersection_kernel, logit=bool(logit)),
            out_shape=jax.ShapeDtypeStruct((N, 1), jnp.float32),
            grid=(n_tiles,),
            in_specs=[pl.BlockSpec((tile_n, M), lambda i: (i, 0)),
                      pl.BlockSpec((tile_n, M), lambda i: (i, 0))],
            out_specs=pl.BlockSpec((tile_n, 1), lambda i: (i, 0)),
            compiler_params=pltpu.CompilerParams(
                dimension_semantics=("parallel",),
                vmem_limit_bytes=vmem_limit),
            cost_estimate=pl.CostEstimate(
                flops=3 * N * M, transcendentals=2 * N * M,
                bytes_accessed=bytes_in + 4 * N),
        )(x2d, t2d)
        # SMOOTH folded once; lane layout for the right-aligned broadcast.
        ip_row = jnp.reshape(inter_col, (1, N)) + jnp.float32(SMOOTH)

        # ---- call 2: per-tile tversky partial sums (row axis "parallel"). --
        partials = pl.pallas_call(
            functools.partial(_tversky_tile_kernel, alpha_beta=alpha_beta,
                              logit=bool(logit), newton=bool(newton)),
            out_shape=jax.ShapeDtypeStruct((8 * n_tiles, 128), jnp.float32),
            grid=(n_tiles,),
            in_specs=[pl.BlockSpec((1, N), lambda i: (0, 0)),
                      pl.BlockSpec((tile_n, M), lambda i: (i, 0)),
                      pl.BlockSpec((tile_n, M), lambda i: (i, 0))],
            out_specs=pl.BlockSpec((8, 128), lambda i: (i, 0)),
            compiler_params=pltpu.CompilerParams(
                dimension_semantics=("parallel",),
                vmem_limit_bytes=vmem_limit),
            cost_estimate=pl.CostEstimate(
                flops=8 * N * M, transcendentals=3 * N * M,
                bytes_accessed=bytes_in + 4 * N + 4096 * n_tiles),
        )(ip_row, x2d, t2d)
        loss = jnp.reshape(
            jnp.float32(1.0) - jnp.sum(partials) * jnp.float32(inv_count), (1,))

    if check_bounds:
        # Mirrors the reference module's host-side `.cpu().detach().numpy()`
        # assert.  Off by default: it forces a device->host sync per call.
        tversky = float(1.0 - loss[0])
        assert 1e-05 <= tversky <= 1, (
            'tversky index out of bounds [1e-5, 1]: %f' % tversky)
    # TODO(synk): class_weights and log=True branches of the reference module
    # are not implemented (defaults class_weights=None, log=False are covered).
    return loss


def _ref_loss(inp, tgt, alpha, beta, logit=True):
    # Pure-JAX transcription of the PyTorch forward (identical broadcasting).
    x = jax.nn.sigmoid(inp) if logit else inp
    inter = jnp.sum(x * tgt, axis=(2, 3))                                # (B, C)
    den = inter + alpha * jnp.abs(x - tgt) + beta * jnp.abs(tgt - x)     # (B, C, W, H)
    tv = (inter + SMOOTH) / (den + SMOOTH)
    tv = jnp.mean(tv, axis=1)
    tv = jnp.mean(tv)
    return jnp.ones((1,), jnp.float32) - tv


if __name__ == "__main__":
    # The reference module's broadcast requires W == B and H == C.
    B, C, W, H = 8, 16, 8, 16
    alpha, beta = 0.7, 0.3

    key = jax.random.PRNGKey(0)
    k1, k2 = jax.random.split(key)
    logits = jax.random.normal(k1, (B, C, W, H), dtype=jnp.float32)
    target = (jax.random.uniform(k2, (B, C, W, H)) < 0.5).astype(jnp.float32)

    ref = jax.block_until_ready(_ref_loss(logits, target, alpha, beta, logit=True))

    # Auto tiling -> resident single-fetch path at this size.
    loss = jax.block_until_ready(
        soft_tversky_loss(logits, target, alpha=alpha, beta=beta, logit=True))
    assert loss.shape == (1,) and loss.dtype == jnp.float32
    assert jnp.allclose(loss, ref, rtol=1e-4, atol=1e-5), (loss, ref)

    # Forced tiled path: exercises both "parallel" row-tiled kernels and the
    # cross-call intersection handoff / partial-sum reduction.
    loss_tiled = jax.block_until_ready(
        soft_tversky_loss(logits, target, alpha=alpha, beta=beta,
                          logit=True, tile_n=32))
    assert jnp.allclose(loss_tiled, ref, rtol=1e-4, atol=1e-5), (loss_tiled, ref)

    # bf16 inputs: on-tile cast + itemsize-aware budgeting (half the HBM bytes).
    loss_bf16 = jax.block_until_ready(
        soft_tversky_loss(logits.astype(jnp.bfloat16),
                          target.astype(jnp.bfloat16),
                          alpha=alpha, beta=beta, logit=True))
    assert jnp.allclose(loss_bf16, ref, rtol=1e-2, atol=1e-3), (loss_bf16, ref)

    print("KERNEL_OK")
</pallas_src>

<mosaic_0001>
module attributes {stable_mosaic.version = 11 : i64} {
  func.func @_tversky_resident_kernel(%arg0: i32, %arg1: memref<128x128xf32, #tpu.memory_space<vmem>>, %arg2: memref<128x128xf32, #tpu.memory_space<vmem>>, %arg3: memref<1x1xf32, #tpu.memory_space<vmem>>) attributes {dimension_semantics = [#tpu.dimension_semantics<arbitrary>], iteration_bounds = array<i64: 1>, scalar_prefetch = 0 : i64, scratch_operands = 0 : i64, tpu.core_type = #tpu.core_type<tc>, window_params = [{pipeline_mode = #tpu.pipeline_mode<synchronous>, transform_indices = @transform_0, window_bounds = array<i64: 128, 128>}, {pipeline_mode = #tpu.pipeline_mode<synchronous>, transform_indices = @transform_1, window_bounds = array<i64: 128, 128>}, {pipeline_mode = #tpu.pipeline_mode<synchronous>, transform_indices = @transform_2, window_bounds = array<i64: 1, 1>}]} {
    %c0 = arith.constant 0 : index
    %c0_0 = arith.constant 0 : index
    %0 = vector.load %arg1[%c0, %c0_0] : memref<128x128xf32, #tpu.memory_space<vmem>>, vector<128x128xf32>
    %1 = arith.negf %0 : vector<128x128xf32>
    %2 = math.exp %1 : vector<128x128xf32>
    %cst = arith.constant 1.000000e+00 : f32
    %3 = vector.broadcast %cst : f32 to vector<128x128xf32>
    %4 = arith.addf %3, %2 : vector<128x128xf32>
    %5 = arith.divf %3, %4 : vector<128x128xf32>
    %c0_1 = arith.constant 0 : index
    %c0_2 = arith.constant 0 : index
    %6 = vector.load %arg2[%c0_1, %c0_2] : memref<128x128xf32, #tpu.memory_space<vmem>>, vector<128x128xf32>
    %7 = arith.mulf %5, %6 : vector<128x128xf32>
    %cst_3 = arith.constant dense<0.000000e+00> : vector<128xf32>
    %8 = vector.multi_reduction <add>, %7, %cst_3 [1] : vector<128x128xf32> to vector<128xf32>
    %9 = vector.shape_cast %8 : vector<128xf32> to vector<128x1xf32>
    %10 = tpu.transpose %9, [1, 0] : vector<128x1xf32> -> vector<1x128xf32>
    %cst_4 = arith.constant 9.99999974E-6 : f32
    %11 = vector.broadcast %cst_4 : f32 to vector<1x128xf32>
    %12 = arith.addf %10, %11 : vector<1x128xf32>
    %13 = arith.subf %5, %6 : vector<128x128xf32>
    %14 = math.absf %13 : vector<128x128xf32>
    %cst_5 = arith.constant 1.000000e+00 : f32
    %15 = vector.broadcast %cst_5 : f32 to vector<128x128xf32>
    %16 = arith.mulf %15, %14 : vector<128x128xf32>
    %17 = vector.broadcast %12 : vector<1x128xf32> to vector<128x128xf32>
    %18 = arith.addf %17, %16 : vector<128x128xf32>
    %19 = tpu.reciprocal %18 {approx = true} : vector<128x128xf32> -> vector<128x128xf32>
    %20 = arith.mulf %18, %19 : vector<128x128xf32>
    %cst_6 = arith.constant 2.000000e+00 : f32
    %21 = vector.broadcast %cst_6 : f32 to vector<128x128xf32>
    %22 = arith.subf %21, %20 : vector<128x128xf32>
    %23 = arith.mulf %19, %22 : vector<128x128xf32>
    %cst_7 = arith.constant dense<0.000000e+00> : vector<128xf32>
    %24 = vector.multi_reduction <add>, %23, %cst_7 [0] : vector<128x128xf32> to vector<128xf32>
    %25 = vector.shape_cast %24 : vector<128xf32> to vector<1x128xf32>
    %26 = arith.mulf %12, %25 : vector<1x128xf32>
    %cst_8 = arith.constant dense<0.000000e+00> : vector<1xf32>
    %27 = vector.multi_reduction <add>, %26, %cst_8 [1] : vector<1x128xf32> to vector<1xf32>
    %28 = vector.shape_cast %27 : vector<1xf32> to vector<1x1xf32>
    %cst_9 = arith.constant 6.10351563E-5 : f32
    %29 = vector.broadcast %cst_9 : f32 to vector<1x1xf32>
    %30 = arith.mulf %28, %29 : vector<1x1xf32>
    %cst_10 = arith.constant 1.000000e+00 : f32
    %31 = vector.broadcast %cst_10 : f32 to vector<1x1xf32>
    %32 = arith.subf %31, %30 : vector<1x1xf32>
    %c0_11 = arith.constant 0 : index
    %c0_12 = arith.constant 0 : index
    %33 = vector.load %arg3[%c0_11, %c0_12] : memref<1x1xf32, #tpu.memory_space<vmem>>, vector<1x1xf32>
    tpu.vector_store %arg3[%c0_11, %c0_12], %32 {strides = array<i32>} : memref<1x1xf32, #tpu.memory_space<vmem>>, vector<1x1xf32>,
    return
  }
  func.func @transform_0(%arg0: i32) -> (i32, i32) {
    %c0_i32 = arith.constant 0 : i32
    %c0_i32_0 = arith.constant 0 : i32
    %c0_i32_1 = arith.constant 0 : i32
    return %c0_i32, %c0_i32_0 : i32, i32
  }
  func.func @transform_1(%arg0: i32) -> (i32, i32) {
    %c0_i32 = arith.constant 0 : i32
    %c0_i32_0 = arith.constant 0 : i32
    %c0_i32_1 = arith.constant 0 : i32
    return %c0_i32, %c0_i32_0 : i32, i32
  }
  func.func @transform_2(%arg0: i32) -> (i32, i32) {
    %c0_i32 = arith.constant 0 : i32
    %c0_i32_0 = arith.constant 0 : i32
    %c0_i32_1 = arith.constant 0 : i32
    return %c0_i32, %c0_i32_0 : i32, i32
  }
}

</mosaic_0001>

<bundles_post_ra>
// kernel: tpu_custom_call.1
= control target key start
LH: loop header
LB: loop body
LE: loop exit
PB: predicated region body
PF: predicated region fallthrough
CT: control target
= control target key end

     0   :  { %7 = vsyncpa [#allocation3], 0  ;;  %s854_s0 = inlined_call_operand.hbm [shape: f32[128,128], index: 0, kind: input, shape index: {}]   ;;  %s855_s1 = inlined_call_operand.hbm [shape: f32[128,128], index: 1, kind: input, shape index: {}]   ;;  %s856_s2 = inlined_call_operand.hbm [shape: f32[1,1], index: 2, kind: output, shape index: {}]  }
   0x1   :  { %8 = vsyncpa [#allocation6], 0 }
   0x2   :  { %9 = vsyncpa [#allocation4], 0  ;;  %s600_s9 = smov [#allocation2]   ;;  %s528_s13 = scalar_lea.hbm %s854_s0, 2048 }
   0x3   :  { %s15_s10 = sshll.u32 %s600_s9, 4  ;;  %p529_p0 = scmp.ne.s32.totalorder %s854_s0, %s528_s13  ;;  %s16_s10 = int_to_ptr.vmem [resolvable:$true] %s15_s10 }
   0x4   :  { %p532_p1 = scmp.lt.u32.totalorder %s528_s13, %s854_s0 }
   0x6   :  { %p534_p2 = pnand %p532_p1, %p529_p0 }
   0x8   :  { %537 = shalt.err (!%p534_p2)
}
   0x9   :  { %s538_s18 = scalar_lea.vmem %s16_s10, 2048  ;;  %p543_p4 = scmp.lt.s32.totalorder %s16_s10, %s16_s10 }
   0xa   :  { %p539_p3 = scmp.ne.s32.totalorder %s16_s10, %s538_s18  ;;  %p544_p5 = scmp.lt.s32.totalorder %s538_s18, %s538_s18 }
   0xc   :  { %p545_p6 = por %p544_p5, %p543_p4 }
   0xe   :  { %p546_p7 = pnand %p545_p6, %p539_p3 }
  0x10   :  { %549 = shalt.err (!%p546_p7)
}
  0x11   :  { %s601_s19 = smov 128   ;;  %s602_s20 = smov 8  }
  0x12   :  { %21 = dma.hbm_to_vmem [thread:$0]  %s854_s0, 2048, %s16_s10, [#allocation3], %s601_s19, %s601_s19, %s602_s20  }
  0x13   :  { %s603_s23 = smov [#allocation5]   ;;  %s550_s27 = scalar_lea.hbm %s855_s1, 2048 }
  0x14   :  { %s27_s24 = sshll.u32 %s603_s23, 4  ;;  %p551_p8 = scmp.ne.s32.totalorder %s855_s1, %s550_s27  ;;  %s28_s24 = int_to_ptr.vmem [resolvable:$true] %s27_s24 }
  0x15   :  { %p554_p9 = scmp.lt.u32.totalorder %s550_s27, %s855_s1 }
  0x17   :  { %p556_p10 = pnand %p554_p9, %p551_p8 }
  0x19   :  { %559 = shalt.err (!%p556_p10)
}
  0x1a   :  { %s560_s4 = scalar_lea.vmem %s28_s24, 2048  ;;  %p565_p12 = scmp.lt.s32.totalorder %s28_s24, %s28_s24 }
  0x1b   :  { %p561_p11 = scmp.ne.s32.totalorder %s28_s24, %s560_s4  ;;  %p566_p13 = scmp.lt.s32.totalorder %s560_s4, %s560_s4 }
  0x1d   :  { %p567_p0 = por %p566_p13, %p565_p12 }
  0x1f   :  { %p568_p1 = pnand %p567_p0, %p561_p11 }
  0x21   :  { %571 = shalt.err (!%p568_p1)
}
  0x22   :  { %33 = dma.hbm_to_vmem [thread:$0]  %s855_s1, 2048, %s28_s24, [#allocation6], %s601_s19, %s601_s19, %s602_s20  }
  0x23   :  { %594 = dma.done.wait [#allocation3], 2048  }
  0x24   :  { %595 = vsyncadd [#allocation3], 4294965248 }
  0x25   :  { %596 = dma.done.wait [#allocation6], 2048  }
  0x26   :  { %597 = vsyncadd [#allocation6], 4294965248  ;;  %v40_v0 = vld [vmem:[#allocation2] sm:$0xff]  ;;  %v41_v1 = vld [vmem:[#allocation2 + $0x8] sm:$0xff]  ;;  %vm387_vm0 = vcmask 1040384   ;;  %s604_s1 = smov [#allocation7]  }
  0x27   :  { %v411_v2 = vmul.f32 -1.442695, %v40_v0  ;;  %v412_v3 = vmul.f32 -1.442695, %v41_v1  ;;  %v42_v4 = vld [vmem:[#allocation2 + $0x10] sm:$0xff]  ;;  %v43_v6 = vld [vmem:[#allocation2 + $0x18] sm:$0xff] }
  0x28   :  { %v413_v5 = vmul.f32 -1.442695, %v42_v4  ;;  %v414_v7 = vmul.f32 -1.442695, %v43_v6  ;;  %v44_v8 = vld [vmem:[#allocation2 + $0x20] sm:$0xff]  ;;  %v45_v9 = vld [vmem:[#allocation2 + $0x28] sm:$0xff] }
  0x29   :  { %432 = vpow2.f32 %v411_v2  ;;  %v415_v10 = vmul.f32 -1.442695, %v44_v8  ;;  %v416_v11 = vmul.f32 -1.442695, %v45_v9  ;;  %v46_v12 = vld [vmem:[#allocation2 + $0x30] sm:$0xff]  ;;  %v47_v14 = vld [vmem:[#allocation2 + $0x38] sm:$0xff] }
  0x2a   :  { %434 = vpow2.f32 %v412_v3  ;;  %v417_v13 = vmul.f32 -1.442695, %v46_v12  ;;  %v418_v15 = vmul.f32 -1.442695, %v47_v14  ;;  %v48_v16 = vld [vmem:[#allocation2 + $0x40] sm:$0xff]  ;;  %v49_v17 = vld [vmem:[#allocation2 + $0x48] sm:$0xff] }
  0x2b   :  { %436 = vpow2.f32 %v413_v5  ;;  %v419_v18 = vmul.f32 -1.442695, %v48_v16  ;;  %v50_v19 = vld [vmem:[#allocation2 + $0x50] sm:$0xff]  ;;  %v420_v20 = vmul.f32 -1.442695, %v49_v17  ;;  %v51_v21 = vld [vmem:[#allocation2 + $0x58] sm:$0xff] }
  0x2c   :  { %438 = vpow2.f32 %v414_v7  ;;  %v421_v22 = vmul.f32 -1.442695, %v50_v19  ;;  %v52_v23 = vld [vmem:[#allocation2 + $0x60] sm:$0xff]  ;;  %v422_v24 = vmul.f32 -1.442695, %v51_v21  ;;  %v53_v45 = vld [vmem:[#allocation2 + $0x68] sm:$0xff] }
  0x2d   :  { %440 = vpow2.f32 %v415_v10  ;;  %v423_v25 = vmul.f32 -1.442695, %v52_v23  ;;  %v54_v48 = vld [vmem:[#allocation2 + $0x70] sm:$0xff]  ;;  %v644_v50 = vld [vmem:[#allocation5] sm:$0xff]  ;;  %v55_v52 = vld [vmem:[#allocation2 + $0x78] sm:$0xff]  ;;  %s401_s6 = sshll.u32 %s604_s1, 4  ;;  %s402_s6 = int_to_ptr.vmem [resolvable:$true] %s401_s6 }
  0x2e   :  { %442 = vpow2.f32 %v416_v11  ;;  %v424_v55 = vmul.f32 -1.442695, %v53_v45  ;;  %v648_v57 = vld [vmem:[#allocation5 + $0x8] sm:$0xff]  ;;  %v650_v58 = vld [vmem:[#allocation5 + $0x10] sm:$0xff]  ;;  %v425_v60 = vmul.f32 -1.442695, %v54_v48  ;;  %p577_p3 = scmp.lt.s32.totalorder %s402_s6, %s402_s6 }
  0x2f   :  { %444 = vpow2.f32 %v417_v13  ;;  %v426_v0 = vmul.f32 -1.442695, %v55_v52  ;;  %v662_v3 = vld [vmem:[#allocation5 + $0x18] sm:$0xff]  ;;  %v676_v10 = vld [vmem:[#allocation5 + $0x20] sm:$0xff]  ;;  %v684_v14 = vld [vmem:[#allocation5 + $0x28] sm:$0xff]  ;;  %vm393_vm1 = vcmask 0  }
  0x30   :  { %446 = vpow2.f32 %v418_v15  ;;  %v690_v17 = vld [vmem:[#allocation5 + $0x30] sm:$0xff]  ;;  %v698_v21 = vld [vmem:[#allocation5 + $0x38] sm:$0xff]  ;;  %s572_s7 = scalar_lea.vmem %s402_s6, 16  ;;  %s576_s8 = scalar_lea.vmem %s402_s6, 32 }
  0x31   :  { %448 = vpow2.f32 %v419_v18  ;;  %p573_p2 = scmp.ne.s32.totalorder %s402_s6, %s572_s7  ;;  %p578_p4 = scmp.lt.s32.totalorder %s576_s8, %s572_s7 }
  0x32   :  { %450 = vpow2.f32 %v420_v20 }
  0x33   :  { %v433_v26 = vpop.eup %432  ;;  %452 = vpow2.f32 %v421_v22  ;;  %p579_p5 = por %p578_p4, %p577_p3 }
  0x34   :  { %v435_v27 = vpop.eup %434  ;;  %v104_v28 = vadd.f32 1.0, %v433_v26  ;;  %454 = vpow2.f32 %v422_v24  ;;  %v704_v24 = vld [vmem:[#allocation5 + $0x40] sm:$0xff] }
  0x35   :  { %v437_v29 = vpop.eup %436  ;;  %v105_v30 = vadd.f32 1.0, %v435_v27  ;;  %456 = vpow2.f32 %v423_v25  ;;  %p580_p6 = pnand %p579_p5, %p573_p2 }
  0x36   :  { %v439_v31 = vpop.eup %438  ;;  %458 = vrcp.f32 %v104_v28  ;;  %v106_v32 = vadd.f32 1.0, %v437_v29  ;;  %v712_v28 = vld [vmem:[#allocation5 + $0x48] sm:$0xff] }
  0x37   :  { %v441_v33 = vpop.eup %440  ;;  %460 = vrcp.f32 %v105_v30  ;;  %v107_v34 = vadd.f32 1.0, %v439_v31  ;;  %v718_v31 = vld [vmem:[#allocation5 + $0x50] sm:$0xff] }
  0x38   :  { %v443_v35 = vpop.eup %442  ;;  %462 = vrcp.f32 %v106_v32  ;;  %v108_v36 = vadd.f32 1.0, %v441_v33 }
  0x39   :  { %v445_v37 = vpop.eup %444  ;;  %464 = vrcp.f32 %v107_v34  ;;  %v109_v38 = vadd.f32 1.0, %v443_v35  ;;  %v726_v35 = vld [vmem:[#allocation5 + $0x58] sm:$0xff] }
  0x3a   :  { %v447_v39 = vpop.eup %446  ;;  %466 = vrcp.f32 %v108_v36  ;;  %v110_v40 = vadd.f32 1.0, %v445_v37 }
  0x3b   :  { %v449_v41 = vpop.eup %448  ;;  %468 = vrcp.f32 %v109_v38  ;;  %v111_v42 = vadd.f32 1.0, %v447_v39  ;;  %v732_v38 = vld [vmem:[#allocation5 + $0x60] sm:$0xff] }
  0x3c   :  { %v451_v43 = vpop.eup %450  ;;  %470 = vrcp.f32 %v110_v40  ;;  %v112_v44 = vadd.f32 1.0, %v449_v41 }
  0x3d   :  { %v453_v46 = vpop.eup %452  ;;  %472 = vrcp.f32 %v111_v42  ;;  %v113_v47 = vadd.f32 1.0, %v451_v43 }
  0x3e   :  { %v455_v49 = vpop.eup %454  ;;  %474 = vrcp.f32 %v112_v44  ;;  %v114_v51 = vadd.f32 1.0, %v453_v46 }
  0x3f   :  { %v457_v53 = vpop.eup %456  ;;  %476 = vrcp.f32 %v113_v47  ;;  %v115_v54 = vadd.f32 1.0, %v455_v49 }
  0x40   :  { %v646_v56 = vpop.eup %458  ;;  %478 = vrcp.f32 %v114_v51  ;;  %v116_v59 = vadd.f32 1.0, %v457_v53  ;;  %v748_v53 = vld [vmem:[#allocation5 + $0x68] sm:$0xff] }
  0x41   :  { %v652_v61 = vpop.eup %460  ;;  %v168_v62 = vmul.f32 %v646_v56, %v644_v50  ;;  %v249_v63 = vsub.f32 %v646_v56, %v644_v50  ;;  %480 = vrcp.f32 %v115_v54  ;;  %v750_v54 = vld [vmem:[#allocation5 + $0x70] sm:$0xff] }
  0x42   :  { %v658_v1 = vpop.eup %462  ;;  %v250_v2 = vsub.f32 %v652_v61, %v648_v57  ;;  %482 = vrcp.f32 %v116_v59  ;;  %v169_v5 = vmul.f32 %v652_v61, %v648_v57  ;;  %v754_v59 = vld [vmem:[#allocation5 + $0x78] sm:$0xff] }
  0x43   :  { %v664_v4 = vpop.eup %464  ;;  %184 = vadd.xlane.f32.xlu0 %v168_v62  ;;  %v170_v6 = vmul.f32 %v658_v1, %v650_v58  ;;  %v251_v7 = vsub.f32 %v658_v1, %v650_v58  ;;  %484 = vpow2.f32 %v424_v55 }
  0x44   :  { %v672_v8 = vpop.eup %466  ;;  %v252_v9 = vsub.f32 %v664_v4, %v662_v3  ;;  %486 = vpow2.f32 %v425_v60  ;;  %v171_v12 = vmul.f32 %v664_v4, %v662_v3 }
  0x45   :  { %v678_v11 = vpop.eup %468  ;;  %188 = vadd.xlane.f32.xlu1 %v170_v6  ;;  %v253_v13 = vsub.f32 %v672_v8, %v676_v10  ;;  %488 = vpow2.f32 %v426_v0  ;;  %v172_v19 = vmul.f32 %v672_v8, %v676_v10 }
  0x46   :  { %v686_v15 = vpop.eup %470  ;;  %v254_v16 = vsub.f32 %v678_v11, %v684_v14  ;;  %v173_v26 = vmul.f32 %v678_v11, %v684_v14 }
  0x47   :  { %v692_v18 = vpop.eup %472  ;;  %186 = vadd.xlane.f32.xlu0 %v169_v5  ;;  %v255_v20 = vsub.f32 %v686_v15, %v690_v17  ;;  %v174_v33 = vmul.f32 %v686_v15, %v690_v17  ;;  %v269_v50 = vand.u32 2147483647, %v253_v13 }
  0x48   :  { %v700_v22 = vpop.eup %474  ;;  %v256_v23 = vsub.f32 %v692_v18, %v698_v21  ;;  %v175_v40 = vmul.f32 %v692_v18, %v698_v21  ;;  %v270_v57 = vand.u32 2147483647, %v254_v16 }
  0x49   :  { %v706_v25 = vpop.eup %476  ;;  %190 = vadd.xlane.f32.xlu1 %v171_v12  ;;  %v257_v27 = vsub.f32 %v700_v22, %v704_v24  ;;  %v176_v45 = vmul.f32 %v700_v22, %v704_v24  ;;  %v271_v61 = vand.u32 2147483647, %v255_v20 }
  0x4a   :  { %v714_v29 = vpop.eup %478  ;;  %v258_v30 = vsub.f32 %v706_v25, %v712_v28  ;;  %v177_v48 = vmul.f32 %v706_v25, %v712_v28  ;;  %v272_v1 = vand.u32 2147483647, %v256_v23 }
  0x4b   :  { %v720_v32 = vpop.eup %480  ;;  %192 = vadd.xlane.f32.xlu0 %v172_v19  ;;  %v259_v34 = vsub.f32 %v714_v29, %v718_v31  ;;  %v178_v49 = vmul.f32 %v714_v29, %v718_v31  ;;  %v273_v4 = vand.u32 2147483647, %v257_v27 }
  0x4c   :  { %v728_v36 = vpop.eup %482  ;;  %v260_v37 = vsub.f32 %v720_v32, %v726_v35  ;;  %v179_v51 = vmul.f32 %v720_v32, %v726_v35 }
  0x4d   :  { %v485_v39 = vpop.eup %484  ;;  %194 = vadd.xlane.f32.xlu1 %v173_v26  ;;  %v261_v41 = vsub.f32 %v728_v36, %v732_v38  ;;  %v180_v52 = vmul.f32 %v728_v36, %v732_v38  ;;  %v275_v11 = vand.u32 2147483647, %v259_v34 }
  0x4e   :  { %v487_v42 = vpop.eup %486  ;;  %v117_v43 = vadd.f32 1.0, %v485_v39  ;;  %v276_v14 = vand.u32 2147483647, %v260_v37 }
  0x4f   :  { %v489_v44 = vpop.eup %488  ;;  %196 = vadd.xlane.f32.xlu0 %v174_v33  ;;  %v118_v46 = vadd.f32 1.0, %v487_v42  ;;  %v277_v16 = vand.u32 2147483647, %v261_v41 }
  0x50   :  { %490 = vrcp.f32 %v117_v43  ;;  %v119_v47 = vadd.f32 1.0, %v489_v44 }
  0x51   :  { %198 = vadd.xlane.f32.xlu1 %v175_v40  ;;  %492 = vrcp.f32 %v118_v46 }
  0x52   :  { %494 = vrcp.f32 %v119_v47 }
  0x53   :  { %200 = vadd.xlane.f32.xlu0 %v176_v45 }
  0x55   :  { %202 = vadd.xlane.f32.xlu1 %v177_v48 }
  0x57   :  { %204 = vadd.xlane.f32.xlu0 %v178_v49 }
  0x59   :  { %206 = vadd.xlane.f32.xlu1 %v179_v51 }
  0x5a   :  { %v752_v55 = vpop.eup %490 }
  0x5b   :  { %v756_v60 = vpop.eup %492  ;;  %208 = vadd.xlane.f32.xlu0 %v180_v52  ;;  %v181_v62 = vmul.f32 %v752_v55, %v748_v53  ;;  %v262_v0 = vsub.f32 %v752_v55, %v748_v53 }
  0x5c   :  { %v762_v5 = vpop.eup %494  ;;  %v182_v6 = vmul.f32 %v756_v60, %v750_v54  ;;  %v263_v12 = vsub.f32 %v756_v60, %v750_v54 }
  0x5d   :  { %210 = vadd.xlane.f32.xlu1 %v181_v62  ;;  %v183_v19 = vmul.f32 %v762_v5, %v754_v59  ;;  %v264_v26 = vsub.f32 %v762_v5, %v754_v59  ;;  %v278_v20 = vand.u32 2147483647, %v262_v0 }
  0x5e   :  { %v279_v25 = vand.u32 2147483647, %v263_v12 }
  0x5f   :  { %212 = vadd.xlane.f32.xlu0 %v182_v6  ;;  %v280_v34 = vand.u32 2147483647, %v264_v26 }
  0x61   :  { %214 = vadd.xlane.f32.xlu1 %v183_v19 }
  0xd0   :  { %v185_v33 = vpop.xlane.xlu0 %184 }
  0xd1   :  { %216 = vxpose.xlu0.b32.start [1/16] (narrow) %v185_v33, 8  ;;  %v281_v33 = vlaneseq }
  0xd2   :  { %v189_v40 = vpop.xlane.xlu1 %188 }
  0xd4   :  { %v187_v39 = vpop.xlane.xlu0 %186 }
  0xd5   :  { %217 = vxpose.xlu0.b32.cont [2/16] (narrow) %v187_v39, 8  ;;  %v282_v39 = vshrl.u32 %v281_v33, 7 }
  0xd6   :  { %v191_v42 = vpop.xlane.xlu1 %190 }
  0xd8   :  { %v193_v43 = vpop.xlane.xlu0 %192 }
  0xd9   :  { %218 = vxpose.xlu0.b32.cont [3/16] (narrow) %v189_v40, 8  ;;  %v283_v40 = vsub.s32 0, %v282_v39 }
  0xda   :  { %v195_v44 = vpop.xlane.xlu1 %194 }
  0xdc   :  { %v197_v45 = vpop.xlane.xlu0 %196 }
  0xdd   :  { %219 = vxpose.xlu0.b32.cont [4/16] (narrow) %v191_v42, 8 }
  0xde   :  { %v199_v46 = vpop.xlane.xlu1 %198 }
  0xe0   :  { %v201_v47 = vpop.xlane.xlu0 %200 }
  0xe1   :  { %220 = vxpose.xlu0.b32.cont [5/16] (narrow) %v193_v43, 8  ;;  %v265_v43 = vand.u32 2147483647, %v249_v63 }
  0xe2   :  { %v203_v48 = vpop.xlane.xlu1 %202 }
  0xe4   :  { %v205_v49 = vpop.xlane.xlu0 %204 }
  0xe5   :  { %221 = vxpose.xlu0.b32.cont [6/16] (narrow) %v195_v44, 8 }
  0xe6   :  { %v207_v51 = vpop.xlane.xlu1 %206 }
  0xe8   :  { %v209_v52 = vpop.xlane.xlu0 %208 }
  0xe9   :  { %222 = vxpose.xlu0.b32.cont [7/16] (narrow) %v197_v45, 8  ;;  %v266_v45 = vand.u32 2147483647, %v250_v2 }
  0xea   :  { %v211_v62 = vpop.xlane.xlu1 %210 }
  0xec   :  { %v213_v6 = vpop.xlane.xlu0 %212 }
  0xed   :  { %223 = vxpose.xlu0.b32.cont [8/16] (narrow) %v199_v46, 8  ;;  %v267_v46 = vand.u32 2147483647, %v251_v7 }
  0xee   :  { %v215_v19 = vpop.xlane.xlu1 %214 }
  0xf1   :  { %224 = vxpose.xlu0.b32.cont [9/16] (narrow) %v201_v47, 8 }
  0xf5   :  { %225 = vxpose.xlu0.b32.cont [10/16] (narrow) %v203_v48, 8  ;;  %v268_v48 = vand.u32 2147483647, %v252_v9  ;;  %v274_v9 = vand.u32 2147483647, %v258_v30 }
  0xf9   :  { %226 = vxpose.xlu0.b32.cont [11/16] (narrow) %v205_v49, 8 }
  0xfd   :  { %227 = vxpose.xlu0.b32.cont [12/16] (narrow) %v207_v51, 8 }
 0x101   :  { %228 = vxpose.xlu0.b32.cont [13/16] (narrow) %v209_v52, 8 }
 0x105   :  { %229 = vxpose.xlu0.b32.cont [14/16] (narrow) %v211_v62, 8 }
 0x109   :  { %230 = vxpose.xlu0.b32.cont [15/16] (narrow) %v213_v6, 8 }
 0x10d   :  { %231 = vxpose.xlu0.b32.end [16/16] (narrow) %v215_v19, 8 }
 0x151   :  { %v232_v42 = vpop.trf.xlu0 }
 0x152   :  { %v775_v44 = vadd.f32 1e-05, %v232_v42 }
 0x154   :  { %v784_v47 = vrot.slane %v775_v44, %v283_v40 }
 0x156   :  { %v285_v56 = vadd.f32 %v784_v47, %v265_v43  ;;  %v286_v58 = vadd.f32 %v784_v47, %v266_v45  ;;  %v287_v63 = vadd.f32 %v784_v47, %v267_v46  ;;  %v288_v2 = vadd.f32 %v784_v47, %v268_v48 }
 0x157   :  { %v289_v3 = vadd.f32 %v784_v47, %v269_v50  ;;  %v290_v7 = vadd.f32 %v784_v47, %v270_v57  ;;  %v291_v8 = vadd.f32 %v784_v47, %v271_v61  ;;  %v292_v10 = vadd.f32 %v784_v47, %v272_v1 }
 0x158   :  { %496 = vrcp.f32 %v285_v56  ;;  %v293_v13 = vadd.f32 %v784_v47, %v273_v4  ;;  %v294_v15 = vadd.f32 %v784_v47, %v274_v9  ;;  %v295_v17 = vadd.f32 %v784_v47, %v275_v11 }
 0x159   :  { %498 = vrcp.f32 %v286_v58  ;;  %v296_v22 = vadd.f32 %v784_v47, %v276_v14  ;;  %v297_v29 = vadd.f32 %v784_v47, %v277_v16  ;;  %v298_v35 = vadd.f32 %v784_v47, %v278_v20 }
 0x15a   :  { %500 = vrcp.f32 %v287_v63  ;;  %v299_v51 = vadd.f32 %v784_v47, %v279_v25  ;;  %v300_v6 = vadd.f32 %v784_v47, %v280_v34 }
 0x15b   :  { %502 = vrcp.f32 %v288_v2 }
 0x15c   :  { %504 = vrcp.f32 %v289_v3 }
 0x15d   :  { %506 = vrcp.f32 %v290_v7 }
 0x15e   :  { %508 = vrcp.f32 %v291_v8 }
 0x15f   :  { %510 = vrcp.f32 %v292_v10 }
 0x160   :  { %512 = vrcp.f32 %v293_v13 }
 0x161   :  { %514 = vrcp.f32 %v294_v15 }
 0x162   :  { %v497_v18 = vpop.eup %496  ;;  %516 = vrcp.f32 %v295_v17 }
 0x163   :  { %v499_v21 = vpop.eup %498  ;;  %v317_v23 = vmul.f32 %v497_v18, %v285_v56  ;;  %518 = vrcp.f32 %v296_v22 }
 0x164   :  { %v501_v24 = vpop.eup %500  ;;  %v318_v27 = vmul.f32 %v499_v21, %v286_v58  ;;  %520 = vrcp.f32 %v297_v29 }
 0x165   :  { %v503_v28 = vpop.eup %502  ;;  %v319_v30 = vmul.f32 %v501_v24, %v287_v63  ;;  %v333_v31 = vsub.f32 2.0, %v317_v23  ;;  %522 = vrcp.f32 %v298_v35 }
 0x166   :  { %v505_v32 = vpop.eup %504  ;;  %v320_v36 = vmul.f32 %v503_v28, %v288_v2  ;;  %v334_v37 = vsub.f32 2.0, %v318_v27  ;;  %524 = vrcp.f32 %v299_v51 }
 0x167   :  { %v507_v38 = vpop.eup %506  ;;  %v321_v41 = vmul.f32 %v505_v32, %v289_v3  ;;  %v335_v53 = vsub.f32 2.0, %v319_v30  ;;  %v349_v54 = vmul.f32 %v497_v18, %v333_v31  ;;  %526 = vrcp.f32 %v300_v6 }
 0x168   :  { %v509_v55 = vpop.eup %508  ;;  %v322_v60 = vmul.f32 %v507_v38, %v290_v7  ;;  %v336_v0 = vsub.f32 2.0, %v320_v36  ;;  %v350_v12 = vmul.f32 %v499_v21, %v334_v37 }
 0x169   :  { %v511_v49 = vpop.eup %510  ;;  %v323_v52 = vmul.f32 %v509_v55, %v291_v8  ;;  %v337_v59 = vsub.f32 2.0, %v321_v41  ;;  %v351_v5 = vmul.f32 %v501_v24, %v335_v53 }
 0x16a   :  { %v365_v26 = vadd.f32 %v350_v12, %v349_v54  ;;  %v513_v62 = vpop.eup %512  ;;  %v324_v19 = vmul.f32 %v511_v49, %v292_v10  ;;  %v338_v33 = vsub.f32 2.0, %v322_v60  ;;  %v352_v39 = vmul.f32 %v503_v28, %v336_v0 }
 0x16b   :  { %v515_v42 = vpop.eup %514  ;;  %v325_v43 = vmul.f32 %v513_v62, %v293_v13  ;;  %v339_v45 = vsub.f32 2.0, %v323_v52  ;;  %v353_v46 = vmul.f32 %v505_v32, %v337_v59 }
 0x16c   :  { %v366_v40 = vadd.f32 %v365_v26, %v351_v5  ;;  %v517_v50 = vpop.eup %516  ;;  %v326_v56 = vmul.f32 %v515_v42, %v294_v15  ;;  %v340_v57 = vsub.f32 2.0, %v324_v19  ;;  %v354_v58 = vmul.f32 %v507_v38, %v338_v33 }
 0x16d   :  { %v519_v63 = vpop.eup %518  ;;  %v327_v1 = vmul.f32 %v517_v50, %v295_v17  ;;  %v341_v47 = vsub.f32 2.0, %v325_v43  ;;  %v355_v2 = vmul.f32 %v509_v55, %v339_v45 }
 0x16e   :  { %v367_v48 = vadd.f32 %v366_v40, %v352_v39  ;;  %v521_v4 = vpop.eup %520  ;;  %v328_v7 = vmul.f32 %v519_v63, %v296_v22  ;;  %v342_v8 = vsub.f32 2.0, %v326_v56  ;;  %v356_v9 = vmul.f32 %v511_v49, %v340_v57 }
 0x16f   :  { %v523_v11 = vpop.eup %522  ;;  %v329_v13 = vmul.f32 %v521_v4, %v297_v29  ;;  %v343_v14 = vsub.f32 2.0, %v327_v1  ;;  %v357_v16 = vmul.f32 %v513_v62, %v341_v47 }
 0x170   :  { %v368_v61 = vadd.f32 %v367_v48, %v353_v46  ;;  %v525_v20 = vpop.eup %524  ;;  %v330_v15 = vmul.f32 %v523_v11, %v298_v35  ;;  %v344_v21 = vsub.f32 2.0, %v328_v7  ;;  %v358_v23 = vmul.f32 %v515_v42, %v342_v8 }
 0x171   :  { %v527_v25 = vpop.eup %526  ;;  %v331_v17 = vmul.f32 %v525_v20, %v299_v51  ;;  %v345_v27 = vsub.f32 2.0, %v329_v13  ;;  %v359_v28 = vmul.f32 %v517_v50, %v343_v14 }
 0x172   :  { %v369_v3 = vadd.f32 %v368_v61, %v354_v58  ;;  %v332_v31 = vmul.f32 %v527_v25, %v300_v6  ;;  %v346_v22 = vsub.f32 2.0, %v330_v15  ;;  %v360_v32 = vmul.f32 %v519_v63, %v344_v21 }
 0x173   :  { %v347_v36 = vsub.f32 2.0, %v331_v17  ;;  %v361_v37 = vmul.f32 %v521_v4, %v345_v27 }
 0x174   :  { %v370_v10 = vadd.f32 %v369_v3, %v355_v2  ;;  %v348_v38 = vsub.f32 2.0, %v332_v31  ;;  %v362_v41 = vmul.f32 %v523_v11, %v346_v22 }
 0x175   :  { %v363_v54 = vmul.f32 %v525_v20, %v347_v36 }
 0x176   :  { %v371_v18 = vadd.f32 %v370_v10, %v356_v9  ;;  %v364_v55 = vmul.f32 %v527_v25, %v348_v38 }
 0x178   :  { %v372_v24 = vadd.f32 %v371_v18, %v357_v16 }
 0x17a   :  { %v373_v30 = vadd.f32 %v372_v24, %v358_v23 }
 0x17c   :  { %v374_v34 = vadd.f32 %v373_v30, %v359_v28 }
 0x17e   :  { %v375_v29 = vadd.f32 %v374_v34, %v360_v32 }
 0x180   :  { %v376_v53 = vadd.f32 %v375_v29, %v361_v37 }
 0x182   :  { %v377_v35 = vadd.f32 %v376_v53, %v362_v41 }
 0x184   :  { %v378_v60 = vadd.f32 %v377_v35, %v363_v54 }
 0x186   :  { %v379_v0 = vadd.f32 %v378_v60, %v364_v55 }
 0x188   :  { %v380_v12 = vrot.slane %v379_v0, 4 }
 0x18a   :  { %v381_v49 = vadd.f32 %v380_v12, %v379_v0 }
 0x18c   :  { %v382_v51 = vrot.slane %v381_v49, 2 }
 0x18e   :  { %v383_v52 = vadd.f32 %v382_v51, %v381_v49 }
 0x190   :  { %v384_v59 = vrot.slane %v383_v52, 1 }
 0x192   :  { %v385_v5 = vadd.f32 %v384_v59, %v383_v52 }
 0x194   :  { %v386_v26 = vmul.f32 %v385_v5, %v775_v44 }
 0x196   :  { %v388_v62 = vsel %vm387_vm0, %v386_v26, 0.0 }
 0x197   :  { %389 = vadd.xlane.f32.xlu1 %v388_v62 }
 0x224   :  { %v390_v6 = vpop.xlane.xlu1 %389 }
 0x225   :  { %v391_v19 = vmul.f32 6.1035156e-05, %v390_v6 }
 0x227   :  { %v392_v33 = vsub.f32 1.0, %v391_v19 }
 0x229   :  { %394 = vst.msk [vmem:[#allocation7] sm:$0x1] %vm393_vm1, %v392_v33 }
 0x22a   :  { %583 = shalt.err (!%p580_p6)
}
 0x22b   :  { %s584_s11 = scalar_lea.hbm %s856_s2, 16 }
 0x22c   :  { %p585_p7 = scmp.ne.s32.totalorder %s856_s2, %s584_s11  ;;  %p588_p8 = scmp.lt.u32.totalorder %s584_s11, %s856_s2 }
 0x22e   :  { %p590_p9 = pnand %p588_p8, %p585_p7 }
 0x230   :  { %593 = shalt.err (!%p590_p9)
}
 0x231   :  { %404 = dma.vmem_to_hbm [thread:$0]  %s402_s6, 16, %s856_s2, [#allocation4]  }
 0x232   :  { %598 = dma.done.wait [#allocation4], 16  }
 0x233   :  { %599 = vsyncadd [#allocation4], 4294967280 }
 0x234   :  { %408 = vsyncpa [#allocation3], 1 }
 0x235   :  { %409 = vsyncpa [#allocation6], 1 }
 0x236   :  { %410 = vsyncpa [#allocation4], 1 }

</bundles_post_ra>
